<compile_context>
chip_gen: v7x
topology: tpu7x:2x2x1
jax: 0.10.0
libtpu: 0.0.40
codegen_flags: <defaults>
</compile_context>

<pallas_src>
from functools import partial

import jax
import jax.numpy as jnp
from jax.experimental import pallas as pl
from jax.experimental.pallas import tpu as pltpu


def _mlp_kernel(n_layers, x_ref, *refs):
    """Per-pixel MLP on a lane-major tile.

    x_ref : (1, 1, TN)   pixels on the lane axis, f32
    refs  : (w0, b0, w1, b1, ..., w_{L-1}, b_{L-1}, o_ref)
              w_0 : (h0, 1)      f32   (used on the VPU)
              w_i : (out, in)    bf16  (i >= 1, used on the MXU)
              b_i : (out, 1)     f32
    o_ref : (1, num_classes, TN) f32
    """
    o_ref = refs[-1]
    params = refs[:-1]

    x = x_ref[0].astype(jnp.float32)                       # (1, TN)

    # Layer 0: in_features == 1 -> pure VPU broadcast FMA, skip the MXU.
    w0 = params[0][...]                                    # (h0, 1)
    b0 = params[1][...]                                    # (h0, 1)
    h = w0 * x + b0                                        # (h0, TN)
    if n_layers > 1:
        h = jnp.maximum(h, 0.0)

    # Hidden / output layers: bf16 MXU matmul, f32 accumulate, f32 bias/ReLU.
    for li in range(1, n_layers):
        w = params[2 * li][...]                            # (out, in) bf16
        b = params[2 * li + 1][...]                        # (out, 1)  f32
        h = jnp.dot(w, h.astype(jnp.bfloat16),
                    preferred_element_type=jnp.float32) + b
        if li != n_layers - 1:
            h = jnp.maximum(h, 0.0)

    o_ref[0] = h.astype(o_ref.dtype)                       # (num_classes, TN)


def ultra_local_forward(x, weights, biases, *, max_tile_n=2048):
    """UltraLocalModel forward.

    x:       (B, 1, H, W) float32   (module semantics require 1 input channel)
    weights: list of (out_i, in_i)  (PyTorch nn.Linear layout)
    biases:  list of (out_i,)
    returns: (B, num_classes, H, W) float32
    """
    B, C, H, W = x.shape
    assert C == 1, "UltraLocalModel reshape semantics require a single input channel"
    n_layers = len(weights)
    num_classes = weights[-1].shape[0]

    N = H * W
    # Lane-dense tiling of the pixel axis: tile is a multiple of 128.
    # max_tile_n=2048 keeps the working set tiny (< 1 MiB VMEM incl. double
    # buffering), well under the v7x 64 MiB / default scoped limits, while
    # leaving plenty of parallel grid steps for megacore sharding.
    tile_n = min(max_tile_n, ((N + 127) // 128) * 128)
    n_tiles = pl.cdiv(N, tile_n)
    N_pad = n_tiles * tile_n

    x_flat = x.reshape(B, 1, N).astype(jnp.float32)
    if N_pad != N:
        x_flat = jnp.pad(x_flat, ((0, 0), (0, 0), (0, N_pad - N)))

    # Layer 0 stays f32 (VPU FMA); later layers feed the MXU in bf16.
    w_list = [weights[0].astype(jnp.float32)] + \
             [w.astype(jnp.bfloat16) for w in weights[1:]]
    b_list = [b.reshape(-1, 1).astype(jnp.float32) for b in biases]

    grid = (B, n_tiles)

    in_specs = [pl.BlockSpec((1, 1, tile_n), lambda b, t: (b, 0, t))]
    params_flat = []
    for w, b in zip(w_list, b_list):
        # Full-array, constant-index blocks: weights/biases stay VMEM-resident.
        in_specs.append(pl.BlockSpec(w.shape, lambda b, t: (0, 0)))
        in_specs.append(pl.BlockSpec(b.shape, lambda b, t: (0, 0)))
        params_flat.extend([w, b])

    out_spec = pl.BlockSpec((1, num_classes, tile_n), lambda b, t: (b, 0, t))

    out = pl.pallas_call(
        partial(_mlp_kernel, n_layers),
        out_shape=jax.ShapeDtypeStruct((B, num_classes, N_pad), jnp.float32),
        grid_spec=pltpu.PrefetchScalarGridSpec(
            num_scalar_prefetch=0,
            grid=grid,
            in_specs=in_specs,
            out_specs=out_spec,
        ),
        compiler_params=pltpu.CompilerParams(
            dimension_semantics=("parallel", "parallel"),
        ),
    )(x_flat, *params_flat)

    # Output already in (B, num_classes, pixels) layout; only a free reshape.
    out = out[:, :, :N].reshape(B, num_classes, H, W)
    return out


def _reference_forward(x, weights, biases, *, bf16_matmuls=False):
    """Pure-JAX replica of the PyTorch forward (weights in (out, in) layout).

    bf16_matmuls=True mirrors the kernel's mixed precision (hidden/output layer
    matmuls take bf16 operands with f32 accumulation) for a tight comparison.
    """
    B, C, H, W = x.shape
    n_layers = len(weights)
    num_classes = weights[-1].shape[0]
    h = x.reshape(B, -1, 1).astype(jnp.float32)            # (B, N, 1)
    for i, (w, b) in enumerate(zip(weights, biases)):
        if i == 0 or not bf16_matmuls:
            h = jnp.einsum("bni,oi->bno", h, w.astype(jnp.float32)) + b
        else:
            h = jnp.einsum("bni,oi->bno",
                           h.astype(jnp.bfloat16), w.astype(jnp.bfloat16),
                           preferred_element_type=jnp.float32) + b
        if i != n_layers - 1:
            h = jnp.maximum(h, 0.0)
    out = jnp.transpose(h, (0, 2, 1)).reshape(B, num_classes, H, W)
    return out


def _init_params(key, hidden_sizes, num_classes):
    """Deterministic nn.Linear-style init, weights stored as (out, in)."""
    sizes = [1] + list(hidden_sizes) + [num_classes]
    weights, biases = [], []
    for fan_in, fan_out in zip(sizes[:-1], sizes[1:]):
        key, kw, kb = jax.random.split(key, 3)
        bound = 1.0 / (fan_in ** 0.5)
        weights.append(jax.random.uniform(kw, (fan_out, fan_in), jnp.float32,
                                          minval=-bound, maxval=bound))
        biases.append(jax.random.uniform(kb, (fan_out,), jnp.float32,
                                         minval=-bound, maxval=bound))
    return weights, biases


if __name__ == "__main__":
    key = jax.random.PRNGKey(0)
    hidden_sizes = [32, 32]
    num_classes = 4
    B, C, H, W = 2, 1, 16, 16           # single-channel input, as forward() implies

    key, kx = jax.random.split(key)
    x = jax.random.normal(kx, (B, C, H, W), dtype=jnp.float32)

    weights, biases = _init_params(key, hidden_sizes, num_classes)

    out = ultra_local_forward(x, weights, biases)
    out = jax.block_until_ready(out)
    assert out.shape == (B, num_classes, H, W), out.shape

    # Tight check against a reference mirroring the kernel's mixed precision.
    ref_mixed = _reference_forward(x, weights, biases, bf16_matmuls=True)
    assert jnp.allclose(out, ref_mixed, atol=1e-3, rtol=1e-3), \
        f"mixed-precision mismatch, max abs err {float(jnp.max(jnp.abs(out - ref_mixed)))}"

    # Loose check against the pure-f32 PyTorch-semantics reference
    # (bf16 MXU operands => ~1e-2 level expected deviation).
    ref_f32 = _reference_forward(x, weights, biases, bf16_matmuls=False)
    assert jnp.allclose(out, ref_f32, atol=5e-2, rtol=5e-2), \
        f"f32 reference mismatch, max abs err {float(jnp.max(jnp.abs(out - ref_f32)))}"

    print("KERNEL_OK")
</pallas_src>

<mosaic_0001>
module attributes {stable_mosaic.version = 11 : i64} {
  func.func @_mlp_kernel(%arg0: i32, %arg1: i32, %arg2: memref<1x1x256xf32, #tpu.memory_space<vmem>>, %arg3: memref<32x1xf32, #tpu.memory_space<vmem>>, %arg4: memref<32x1xf32, #tpu.memory_space<vmem>>, %arg5: memref<32x32xbf16, #tpu.memory_space<vmem>>, %arg6: memref<32x1xf32, #tpu.memory_space<vmem>>, %arg7: memref<4x32xbf16, #tpu.memory_space<vmem>>, %arg8: memref<4x1xf32, #tpu.memory_space<vmem>>, %arg9: memref<1x4x256xf32, #tpu.memory_space<vmem>>) attributes {dimension_semantics = [#tpu.dimension_semantics<parallel>, #tpu.dimension_semantics<parallel>], iteration_bounds = array<i64: 2, 1>, scalar_prefetch = 0 : i64, scratch_operands = 0 : i64, tpu.core_type = #tpu.core_type<tc>, window_params = [{transform_indices = @transform_0, window_bounds = array<i64: 1, 1, 256>}, {pipeline_mode = #tpu.pipeline_mode<synchronous>, transform_indices = @transform_1, window_bounds = array<i64: 32, 1>}, {pipeline_mode = #tpu.pipeline_mode<synchronous>, transform_indices = @transform_2, window_bounds = array<i64: 32, 1>}, {pipeline_mode = #tpu.pipeline_mode<synchronous>, transform_indices = @transform_3, window_bounds = array<i64: 32, 32>}, {pipeline_mode = #tpu.pipeline_mode<synchronous>, transform_indices = @transform_4, window_bounds = array<i64: 32, 1>}, {pipeline_mode = #tpu.pipeline_mode<synchronous>, transform_indices = @transform_5, window_bounds = array<i64: 4, 32>}, {pipeline_mode = #tpu.pipeline_mode<synchronous>, transform_indices = @transform_6, window_bounds = array<i64: 4, 1>}, {transform_indices = @transform_7, window_bounds = array<i64: 1, 4, 256>}]} {
    %c0 = arith.constant 0 : index
    %c0_0 = arith.constant 0 : index
    %c0_1 = arith.constant 0 : index
    %0 = vector.load %arg2[%c0, %c0_0, %c0_1] : memref<1x1x256xf32, #tpu.memory_space<vmem>>, vector<1x1x256xf32>
    %1 = vector.shape_cast %0 : vector<1x1x256xf32> to vector<1x256xf32>
    %c0_2 = arith.constant 0 : index
    %c0_3 = arith.constant 0 : index
    %2 = vector.load %arg3[%c0_2, %c0_3] : memref<32x1xf32, #tpu.memory_space<vmem>>, vector<32x1xf32>
    %c0_4 = arith.constant 0 : index
    %c0_5 = arith.constant 0 : index
    %3 = vector.load %arg4[%c0_4, %c0_5] : memref<32x1xf32, #tpu.memory_space<vmem>>, vector<32x1xf32>
    %4 = vector.broadcast %2 : vector<32x1xf32> to vector<32x256xf32>
    %5 = vector.broadcast %1 : vector<1x256xf32> to vector<32x256xf32>
    %6 = arith.mulf %4, %5 : vector<32x256xf32>
    %7 = vector.broadcast %3 : vector<32x1xf32> to vector<32x256xf32>
    %8 = arith.addf %6, %7 : vector<32x256xf32>
    %cst = arith.constant 0.000000e+00 : f32
    %9 = vector.broadcast %cst : f32 to vector<32x256xf32>
    %10 = arith.maximumf %8, %9 : vector<32x256xf32>
    %c0_6 = arith.constant 0 : index
    %c0_7 = arith.constant 0 : index
    %11 = vector.load %arg5[%c0_6, %c0_7] : memref<32x32xbf16, #tpu.memory_space<vmem>>, vector<32x32xbf16>
    %c0_8 = arith.constant 0 : index
    %c0_9 = arith.constant 0 : index
    %12 = vector.load %arg6[%c0_8, %c0_9] : memref<32x1xf32, #tpu.memory_space<vmem>>, vector<32x1xf32>
    %13 = arith.truncf %10 : vector<32x256xf32> to vector<32x256xbf16>
    %cst_10 = arith.constant dense<0.000000e+00> : vector<32x256xf32>
    %14 = tpu.matmul %11, %13, %cst_10 {dimension_numbers = #tpu.dot_dimension_numbers<[1], [0], [0], [1], [0, 0, 1, 1], [], []>} : vector<32x32xbf16>, vector<32x256xbf16>, vector<32x256xf32> -> vector<32x256xf32>
    %15 = vector.broadcast %12 : vector<32x1xf32> to vector<32x256xf32>
    %16 = arith.addf %14, %15 : vector<32x256xf32>
    %cst_11 = arith.constant 0.000000e+00 : f32
    %17 = vector.broadcast %cst_11 : f32 to vector<32x256xf32>
    %18 = arith.maximumf %16, %17 : vector<32x256xf32>
    %c0_12 = arith.constant 0 : index
    %c0_13 = arith.constant 0 : index
    %19 = vector.load %arg7[%c0_12, %c0_13] : memref<4x32xbf16, #tpu.memory_space<vmem>>, vector<4x32xbf16>
    %c0_14 = arith.constant 0 : index
    %c0_15 = arith.constant 0 : index
    %20 = vector.load %arg8[%c0_14, %c0_15] : memref<4x1xf32, #tpu.memory_space<vmem>>, vector<4x1xf32>
    %21 = arith.truncf %18 : vector<32x256xf32> to vector<32x256xbf16>
    %cst_16 = arith.constant dense<0.000000e+00> : vector<4x256xf32>
    %22 = tpu.matmul %19, %21, %cst_16 {dimension_numbers = #tpu.dot_dimension_numbers<[1], [0], [0], [1], [0, 0, 1, 1], [], []>} : vector<4x32xbf16>, vector<32x256xbf16>, vector<4x256xf32> -> vector<4x256xf32>
    %23 = vector.broadcast %20 : vector<4x1xf32> to vector<4x256xf32>
    %24 = arith.addf %22, %23 : vector<4x256xf32>
    %c0_17 = arith.constant 0 : index
    %c0_18 = arith.constant 0 : index
    %c0_19 = arith.constant 0 : index
    %25 = vector.load %arg9[%c0_17, %c0_18, %c0_19] : memref<1x4x256xf32, #tpu.memory_space<vmem>>, vector<1x4x256xf32>
    %26 = vector.shape_cast %25 : vector<1x4x256xf32> to vector<4x256xf32>
    %27 = vector.shape_cast %24 : vector<4x256xf32> to vector<1x4x256xf32>
    tpu.vector_store %arg9[%c0_17, %c0_18, %c0_19], %27 {strides = array<i32>} : memref<1x4x256xf32, #tpu.memory_space<vmem>>, vector<1x4x256xf32>,
    return
  }
  func.func @transform_0(%arg0: i32, %arg1: i32) -> (i32, i32, i32) {
    %c0_i32 = arith.constant 0 : i32
    %c0_i32_0 = arith.constant 0 : i32
    return %arg0, %c0_i32, %arg1 : i32, i32, i32
  }
  func.func @transform_1(%arg0: i32, %arg1: i32) -> (i32, i32) {
    %c0_i32 = arith.constant 0 : i32
    %c0_i32_0 = arith.constant 0 : i32
    %c0_i32_1 = arith.constant 0 : i32
    return %c0_i32, %c0_i32_0 : i32, i32
  }
  func.func @transform_2(%arg0: i32, %arg1: i32) -> (i32, i32) {
    %c0_i32 = arith.constant 0 : i32
    %c0_i32_0 = arith.constant 0 : i32
    %c0_i32_1 = arith.constant 0 : i32
    return %c0_i32, %c0_i32_0 : i32, i32
  }
  func.func @transform_3(%arg0: i32, %arg1: i32) -> (i32, i32) {
    %c0_i32 = arith.constant 0 : i32
    %c0_i32_0 = arith.constant 0 : i32
    %c0_i32_1 = arith.constant 0 : i32
    return %c0_i32, %c0_i32_0 : i32, i32
  }
  func.func @transform_4(%arg0: i32, %arg1: i32) -> (i32, i32) {
    %c0_i32 = arith.constant 0 : i32
    %c0_i32_0 = arith.constant 0 : i32
    %c0_i32_1 = arith.constant 0 : i32
    return %c0_i32, %c0_i32_0 : i32, i32
  }
  func.func @transform_5(%arg0: i32, %arg1: i32) -> (i32, i32) {
    %c0_i32 = arith.constant 0 : i32
    %c0_i32_0 = arith.constant 0 : i32
    %c0_i32_1 = arith.constant 0 : i32
    return %c0_i32, %c0_i32_0 : i32, i32
  }
  func.func @transform_6(%arg0: i32, %arg1: i32) -> (i32, i32) {
    %c0_i32 = arith.constant 0 : i32
    %c0_i32_0 = arith.constant 0 : i32
    %c0_i32_1 = arith.constant 0 : i32
    return %c0_i32, %c0_i32_0 : i32, i32
  }
  func.func @transform_7(%arg0: i32, %arg1: i32) -> (i32, i32, i32) {
    %c0_i32 = arith.constant 0 : i32
    %c0_i32_0 = arith.constant 0 : i32
    return %arg0, %c0_i32, %arg1 : i32, i32, i32
  }
}

</mosaic_0001>

<bundles_post_ra>
// kernel: tpu_custom_call.1
= control target key start
LH: loop header
LB: loop body
LE: loop exit
PB: predicated region body
PF: predicated region fallthrough
CT: control target
= control target key end

     0   :  { %12 = vsyncpa [#allocation3], 0  ;;  %s1018_s0 = inlined_call_operand.vmem [shape: f32[2,1,256], index: 0, kind: input, shape index: {}]   ;;  %s1019_s1 = inlined_call_operand.vmem [shape: f32[32,1], index: 1, kind: input, shape index: {}]   ;;  %s1020_s2 = inlined_call_operand.vmem [shape: f32[32,1], index: 2, kind: input, shape index: {}]   ;;  %s1021_s3 = inlined_call_operand.vmem [shape: bf16[32,32], index: 3, kind: input, shape index: {}]   ;;  %s1022_s4 = inlined_call_operand.vmem [shape: f32[32,1], index: 4, kind: input, shape index: {}]   ;;  %s1023_s5 = inlined_call_operand.vmem [shape: bf16[4,32], index: 5, kind: input, shape index: {}]   ;;  %s1024_s6 = inlined_call_operand.vmem [shape: f32[4,1], index: 6, kind: input, shape index: {}]   ;;  %s1025_s7 = inlined_call_operand.hbm [shape: f32[2,4,256], index: 7, kind: output, shape index: {}]  }
   0x1   :  { %14 = vsyncpa [#allocation3 + $0x1], 0  ;;  %s850_s24 = smov 0   ;;  %s852_s25 = smov 0  }
   0x2   :  { %s854_s26 = smov 0   ;;  %s856_s27 = smov 0  }
   0x3   :  { %s858_s28 = smov 0   ;;  %s860_s29 = smov 0  }
   0x4 LB: > { %s650_s30 = sadd.s32 4294967295, %s806_s29   ;;  %s651_s8 = sadd.s32 4294967294, %s806_s29   ;;  %s806_s29 = sphi %s860_s29, %s20_s29   ;;  %s802_s28 = sphi %s858_s28, %s1032_s28   ;;  %s798_s27 = sphi %s856_s27, %s1031_s27   ;;  %s794_s26 = sphi %s854_s26, %s1030_s26   ;;  %s790_s25 = sphi %s852_s25, %s1029_s25   ;;  %s786_s24 = sphi %s850_s24, %s1028_s24  }
   0x5   : > { %s32_s9 = sadd.s32 1, %s802_s28  ;;  %s195_s10 = sadd.s32 1, %s794_s26 }
   0x6   : > { %p34_p0 = scmp.ge.s32.totalorder %s32_s9, 2  ;;  %p205_p1 = scmp.ne.s32.totalorder %s794_s26, %s790_s25 }
   0x7   : > { %p206_p2 = scmp.eq.s32.totalorder %s650_s30, 1  ;;  %p211_p3 = scmp.ne.s32.totalorder %s790_s25, %s786_s24 }
   0x8   : > { %s1034_s9 = smov (%p34_p0, %s32_s9), 0  ;;  %p212_p5 = scmp.eq.s32.totalorder %s651_s8, 1 }
   0x9   : > { %p890_p4 = por %p206_p2, %p205_p1  ;;  %s190_s12 = ssub.s32 %s802_s28, %s1034_s9 }
   0xa   : > { %p654_p6 = scmp.ge.s32.totalorder %s806_s29, 1  ;;  %p193_p7 = scmp.eq.s32.totalorder %s190_s12, 0 }
   0xb   : > { %p897_p8 = por %p212_p5, %p211_p3  ;;  %p260_p9 = scmp.lt.s32.totalorder %s806_s29, 3 }
   0xc   : > { %s903_s14 = scalar_select %p193_p7, %s794_s26, %s195_s10  }
   0xd   : > { %p261_p10 = pnand %p654_p6, %p260_p9 }
   0xe   : > { %v311_v0 = vld [vmem:[%s1020_s2] sm:$0xff] (!%p261_p10)  ;;  %v808_v2 = vmov (!%p261_p10), 0   ;;  %v312_v3 = vld [vmem:[%s1020_s2 + $0x8] sm:$0xff] (!%p261_p10)  ;;  %v310_v5 = vld [vmem:[%s1019_s1 + $0x18] sm:$0xff] (!%p261_p10)  ;;  %p296_p11 = scmp.lt.s32.totalorder (!%p261_p10), %s798_s27, 1  ;;  %v336_v14 = vlaneseq (!%p261_p10)  ;;  %vm432_vm0 = vcmask (!%p261_p10), 261120  }
   0xf   : > { %264 = sbr.rel (%p261_p10) target bundleno = 630 (0x276), region = 48  ;;  %v307_v1 = vld [vmem:[%s1019_s1] sm:$0xff] (!%p261_p10)  ;;  %725 = vset.pattern.permute.xlu1 (!%p261_p10), %v808_v2  ;;  %724 = vset.pattern.permute.xlu0 (!%p261_p10), %v808_v2  ;;  %v308_v4 = vld [vmem:[%s1019_s1 + $0x8] sm:$0xff] (!%p261_p10)  ;;  %v309_v6 = vld [vmem:[%s1019_s1 + $0x10] sm:$0xff] (!%p261_p10)  ;;  %s292_s10 = sand.u32 (!%p261_p10), 1, %s790_s25  }
  0x10   : > { %356 = vperm.xlu1 (!%p261_p10), %725, %v311_v0   ;;  %317 = vperm.xlu0 (!%p261_p10), %724, %v307_v1   ;;  %v314_v7 = vld [vmem:[%s1020_s2 + $0x18] sm:$0xff] (!%p261_p10)  ;;  %v313_v8 = vld [vmem:[%s1020_s2 + $0x10] sm:$0xff] (!%p261_p10)  ;;  %v395_v9 = vld [vmem:[%s1022_s4 + $0x8] sm:$0xff] (!%p261_p10)  ;;  %v337_v15 = vshrl.u32 (!%p261_p10), %v336_v14, 7  ;;  %s655_s12 = sshll.u32 (!%p261_p10), %s292_s10, 3  ;;  %s561_s21 = scalar_lea.sflag (!%p261_p10), [#allocation3], %s292_s10 }
  0x11   : > { %471 = vmatprep.mubr.bf16.mxu0 (!%p261_p10), %v808_v2  ;;  %546 = vmatprep.mubr.bf16.mxu1 (!%p261_p10), %v808_v2  ;;  %v394_v10 = vld [vmem:[%s1022_s4] sm:$0xff] (!%p261_p10)  ;;  %v397_v11 = vld [vmem:[%s1022_s4 + $0x18] sm:$0xff] (!%p261_p10)  ;;  %v396_v12 = vld [vmem:[%s1022_s4 + $0x10] sm:$0xff] (!%p261_p10) }
  0x12   : > { %v501_v13 = vld [vmem:[%s1024_s6] sm:$0xf] (!%p261_p10)  ;;  %v338_v16 = vsub.s32 (!%p261_p10), 0, %v337_v15  ;;  %v342_v17 = vsub.s32 (!%p261_p10), 1, %v337_v15  ;;  %v727_v58 = vld [vmem:[%s1021_s3 + $0x8] sm:$0xff] (!%p261_p10)  }
  0x13   : > { %v726_v57 = vld [vmem:[%s1021_s3] sm:$0xff] (!%p261_p10)  }
  0x14   : > { %361 = vperm.xlu1 (!%p261_p10), %725, %v312_v3   ;;  %322 = vperm.xlu0 (!%p261_p10), %724, %v308_v4  }
  0x16   : > { %s297_s15 = scalar_select %p296_p11, %s798_s27, 1 }
  0x18   : > { %332 = vperm.xlu1 %725, %v310_v5   ;;  %327 = vperm.xlu0 %724, %v309_v6   ;;  %s656_s16 = sshll.u32 %s297_s15, 1  ;;  %s667_s15 = sshll.u32 %s798_s27, 7 }
  0x19   : > { %s302_s19 = scalar_lea.vmem %s1018_s0, %s656_s16  ;;  %s294_s16 = scalar_lea.vmem [#allocation2], %s655_s12 }
  0x1a   : > { %v306_v18 = vld [vmem:[%s302_s19] sm:$0x3]  ;;  %s577_s17 = sshll.u32 %s294_s16, 4  ;;  %s971_s20 = scalar_lea.hbm %s1025_s7, %s667_s15  ;;  %s973_s17 = int_to_ptr.vmem [resolvable:$true] %s577_s17 }
  0x1b   : > { %v339_v19 = vrot.slane %v306_v18, %v338_v16  ;;  %v343_v20 = vrot.slane %v306_v18, %v342_v17  ;;  %s728_s22 = scalar_lea.vmem %s973_s17, 128  ;;  %s809_s27 = smov [#allocation2]  }
  0x1c   : > { %371 = vperm.xlu1 %725, %v314_v7   ;;  %366 = vperm.xlu0 %724, %v313_v8   ;;  %p729_p12 = scmp.ne.s32.totalorder %s973_s17, %s728_s22  ;;  %s732_s23 = sshll.u32 %s809_s27, 4  ;;  %s733_s23 = int_to_ptr.vmem [resolvable:$false] %s732_s23 }
  0x1d   : > { %s734_s30 = scalar_lea.vmem %s733_s23, 256  ;;  %p735_p1 = scmp.lt.s32.totalorder %s973_s17, %s733_s23 }
  0x1e   : > { %p730_p13 = pnand %p729_p12, %p890_p4  ;;  %p736_p2 = scmp.lt.s32.totalorder %s734_s30, %s728_s22 }
  0x20   : > { %409 = vperm.xlu1 %725, %v395_v9   ;;  %404 = vperm.xlu0 %724, %v394_v10   ;;  %p731_p0 = pneg %p730_p13  ;;  %p737_p3 = por %p736_p2, %p735_p1 }
  0x22   : > { %p738_p5 = pnand %p737_p3, %p731_p0 }
  0x24   : > { %419 = vperm.xlu1 %725, %v397_v11   ;;  %414 = vperm.xlu0 %724, %v396_v12  }
  0x28   : > { %508 = vperm.xlu0 %724, %v501_v13  }
  0x8f   : > { %v357_v21 = vpop.permute.xlu1 %356  ;;  %v318_v22 = vpop.permute.xlu0 %317 }
  0x90   : > { %v346_v23 = vmul.f32 %v339_v19, %v318_v22  ;;  %v347_v24 = vmul.f32 %v343_v20, %v318_v22 }
  0x92   : > { %v374_v29 = vadd.f32 %v357_v21, %v346_v23  ;;  %v375_v30 = vadd.f32 %v357_v21, %v347_v24 }
  0x93   : > { %v362_v25 = vpop.permute.xlu1 %361  ;;  %v323_v26 = vpop.permute.xlu0 %322 }
  0x94   : > { %v348_v27 = vmul.f32 %v339_v19, %v323_v26  ;;  %v349_v28 = vmul.f32 %v343_v20, %v323_v26  ;;  %v383_v35 = vmax.f32 %v375_v30, 0.0  ;;  %v382_v37 = vmax.f32 %v374_v29, 0.0 }
  0x96   : > { %v376_v31 = vadd.f32 %v362_v25, %v348_v27  ;;  %v377_v32 = vadd.f32 %v362_v25, %v349_v28  ;;  %v500_v27 = vld [vmem:[%s1023_s5] sm:$0x3] }
  0x97   : > { %v333_v33 = vpop.permute.xlu1 %332  ;;  %v328_v34 = vpop.permute.xlu0 %327 }
  0x98   : > { %v385_v36 = vmax.f32 %v377_v32, 0.0  ;;  %v384_v38 = vmax.f32 %v376_v31, 0.0  ;;  %v352_v39 = vmul.f32 %v339_v19, %v333_v33  ;;  %v353_v40 = vmul.f32 %v343_v20, %v333_v33 }
  0x99   : > { %v350_v41 = vmul.f32 %v339_v19, %v328_v34  ;;  %v351_v42 = vmul.f32 %v343_v20, %v328_v34 }
  0x9a   : > { %v399_v45 = vpack.c.bf16 %v385_v36, %v383_v35  ;;  %v398_v46 = vpack.c.bf16 %v384_v38, %v382_v37 }
  0x9b   : > { %v372_v43 = vpop.permute.xlu1 %371  ;;  %v367_v44 = vpop.permute.xlu0 %366 }
  0x9c   : > { %v380_v47 = vadd.f32 %v372_v43, %v352_v39  ;;  %v381_v48 = vadd.f32 %v372_v43, %v353_v40  ;;  %v378_v49 = vadd.f32 %v367_v44, %v350_v41  ;;  %v379_v50 = vadd.f32 %v367_v44, %v351_v42  ;;  %439 = vmatprep.subr.bf16.mxu0 %v399_v45 }
  0x9d   : > { %440 = vmatpush1.bf16.msra.mxu0 %v398_v46 }
  0x9e   : > { %v388_v51 = vmax.f32 %v380_v47, 0.0  ;;  %v389_v52 = vmax.f32 %v381_v48, 0.0  ;;  %v386_v53 = vmax.f32 %v378_v49, 0.0  ;;  %v387_v54 = vmax.f32 %v379_v50, 0.0 }
  0x9f   : > { %v405_v59 = vpop.permute.xlu0 %404  ;;  %v410_v63 = vpop.permute.xlu1 %409 }
  0xa0   : > { %v401_v55 = vpack.c.bf16 %v389_v52, %v387_v54  ;;  %v400_v56 = vpack.c.bf16 %v388_v51, %v386_v53 }
  0xa2   : > { %441 = vmatprep.subr.bf16.mxu0 %v401_v55 }
  0xa3   : > { %442 = vmatpush1.bf16.msra.mxu0 %v400_v56  ;;  %v415_v10 = vpop.permute.xlu0 %414  ;;  %v420_v15 = vpop.permute.xlu1 %419 }
  0xa6   : > { %659 = vmatmul.mubr.msk.bf16.vlgmr.msra.gmra.mrb[0].mxu0 %vm432_vm0, %v726_v57 }
  0xa7   : > { %481 = vmatprep.mubr.bf16.mxu0 %v808_v2  ;;  %v509_v28 = vpop.permute.xlu0 %508 }
  0xae   : > { %660 = vmatmul.mubr.msk.bf16.gmra.mrb[4].mxu0 %vm432_vm0, %v727_v58 }
 0x179   : > { %v473_v60 = vpop.f32.mrb[0].mxu0 }
 0x17a   : > { %v474_v61 = vadd.f32 %v473_v60, %v405_v59  ;;  %v475_v62 = vpop.f32.mrb[1].mxu0 }
 0x17b   : > { %v476_v0 = vadd.f32 %v475_v62, %v405_v59  ;;  %v477_v1 = vpop.f32.mrb[2].mxu0 }
 0x17c   : > { %v478_v3 = vadd.f32 %v477_v1, %v410_v63  ;;  %v479_v4 = vpop.f32.mrb[3].mxu0  ;;  %v492_v6 = vmax.f32 %v474_v61, 0.0 }
 0x17d   : > { %v480_v5 = vadd.f32 %v479_v4, %v410_v63  ;;  %v493_v8 = vmax.f32 %v476_v0, 0.0 }
 0x17e   : > { %v494_v7 = vmax.f32 %v478_v3, 0.0 }
 0x17f   : > { %v495_v2 = vmax.f32 %v480_v5, 0.0 }
 0x180   : > { %v502_v9 = vpack.c.bf16 %v494_v7, %v492_v6 }
 0x181   : > { %v483_v11 = vpop.f32.mrb[4].mxu0  ;;  %v503_v12 = vpack.c.bf16 %v495_v2, %v493_v8 }
 0x182   : > { %v484_v13 = vadd.f32 %v483_v11, %v415_v10  ;;  %v485_v14 = vpop.f32.mrb[5].mxu0 }
 0x183   : > { %v486_v16 = vadd.f32 %v485_v14, %v415_v10  ;;  %v487_v17 = vpop.f32.mrb[6].mxu0  ;;  %514 = vmatprep.subr.bf16.mxu1 %v503_v12 }
 0x184   : > { %v488_v18 = vadd.f32 %v487_v17, %v420_v15  ;;  %v489_v19 = vpop.f32.mrb[7].mxu0  ;;  %515 = vmatpush1.bf16.msra.mxu1 %v502_v9  ;;  %v496_v21 = vmax.f32 %v484_v13, 0.0 }
 0x185   : > { %v490_v20 = vadd.f32 %v489_v19, %v420_v15  ;;  %v497_v23 = vmax.f32 %v486_v16, 0.0 }
 0x186   : > { %v498_v22 = vmax.f32 %v488_v18, 0.0 }
 0x187   : > { %v499_v24 = vmax.f32 %v490_v20, 0.0 }
 0x188   : > { %v504_v25 = vpack.c.bf16 %v498_v22, %v496_v21 }
 0x189   : > { %v505_v26 = vpack.c.bf16 %v499_v24, %v497_v23 }
 0x18b   : > { %516 = vmatprep.subr.bf16.mxu1 %v505_v26 }
 0x18c   : > { %517 = vmatpush1.bf16.msra.mxu1 %v504_v25 }
 0x18f   : > { %661 = vmatmul.mubr.msk.bf16.vlgmr.msra.gmra.mrb[0].mxu1 %vm432_vm0, %v500_v27 }
 0x262   : > { %v548_v29 = vpop.f32.mrb[0].mxu1 }
 0x263   : > { %v549_v30 = vadd.f32 %v548_v29, %v509_v28  ;;  %v550_v31 = vpop.f32.mrb[1].mxu1 }
 0x264   : > { %v551_v32 = vadd.f32 %v550_v31, %v509_v28  ;;  %v552_v33 = vpop.f32.mrb[2].mxu1 }
 0x265   : > { %v553_v34 = vpop.f32.mrb[3].mxu1 }
 0x266   : > { %v557_v35 = vcombine.low %v549_v30, %v551_v32 }
 0x268   : > { %559 = vst [vmem:[%s294_s16] sm:$0xff] %v557_v35 }
 0x269   : > { %741 = shalt.err (!%p738_p5)
}
 0x26a   : > { %s742_s8 = scalar_lea.hbm %s971_s20, 128  ;;  %s746_s15 = scalar_lea.hbm %s1025_s7, 256 }
 0x26b   : > { %p743_p6 = scmp.ne.s32.totalorder %s971_s20, %s742_s8  ;;  %p747_p10 = scmp.lt.u32.totalorder %s971_s20, %s1025_s7 }
 0x26c   : > { %p748_p11 = scmp.lt.u32.totalorder %s746_s15, %s742_s8  ;;  %p750_p13 = scmp.lt.u32.totalorder %s742_s8, %s971_s20 }
 0x26d   : > { %p744_p7 = pnand %p743_p6, %p890_p4 }
 0x26e   : > { %p749_p12 = por %p748_p11, %p747_p10 }
 0x26f   : > { %p745_p9 = pneg %p744_p7 }
 0x270   : > { %p751_p0 = por %p750_p13, %p749_p12 }
 0x272   : > { %p752_p1 = pnand %p751_p0, %p745_p9 }
 0x274   : > { %755 = shalt.err (!%p752_p1)
}
 0x275   : > { %668 = dma.vmem_to_hbm [thread:$0]  (%p890_p4), %s973_s17, 128, %s971_s20, %s561_s21  }
 0x276 PF: > { %p674_p2 = scmp.ge.s32.totalorder %s806_s29, 2  ;;  %s589_s19 = sand.u32 1, %s786_s24  }
 0x277   : > { %s590_s22 = scalar_lea.sflag [#allocation3], %s589_s19 }
 0x278   : > { %p671_p3 = pnand %p674_p2, %p897_p8 }
 0x27a   : > { %781 = dma.done.wait (!%p671_p3), %s590_s22, 128  }
 0x27b   : > { %783 = vsyncadd (!%p671_p3), %s590_s22, 4294967168  ;;  %s20_s29 = sadd.s32 1, %s806_s29   ;;  %s1028_s24 = smov %s790_s25 }
 0x27c   : > { %p17_p5 = scmp.ge.s32.totalorder %s20_s29, 4   ;;  %s1029_s25 = smov %s794_s26 }
 0x27d   : > { %s1030_s26 = smov %s903_s14  ;;  %s1031_s27 = smov %s802_s28 }
 0x27e   : > { %s1032_s28 = smov %s1034_s9  ;;  %19 = sbr.rel (!%p17_p5) target bundleno = 4 (0x4), region = 83 }
 0x285   :  { %595 = vsyncpa [#allocation3], 1 }
 0x286   :  { %597 = vsyncpa [#allocation3 + $0x1], 1 }

</bundles_post_ra>
